<compile_context>
chip_gen: v7x
topology: tpu7x:2x2x1
jax: 0.10.0
libtpu: 0.0.40
codegen_flags: <defaults>
</compile_context>

<pallas_src>
import functools

import jax
import jax.numpy as jnp
from jax.experimental import pallas as pl
from jax.experimental.pallas import tpu as pltpu


def _round_up(n, m):
    return ((n + m - 1) // m) * m


def pack_qnet_params(w1, b1, w2, b2, lanes=128):
    """Pack PyTorch-convention Linear params into one pre-transposed, pre-padded slab.

    Call this ONCE when parameters change (agent state), not per forward call.

    Layout (f32, shape [R0 + H padded to 8, lanes]):
      rows [0, S)      cols [0, H) : w1.T   ([S, H])
      row  S           cols [0, H) : b1
      row  S + 1       cols [0, A) : b2
      rows [R0, R0+H)  cols [0, A) : w2.T   ([H, A]),  R0 = round_up(S + 2, 8)
    """
    H, S = w1.shape
    A = w2.shape[0]
    assert H <= lanes and A <= lanes, "hidden/action dims must fit one lane tile"
    R0 = _round_up(S + 2, 8)
    rows = _round_up(R0 + H, 8)
    slab = jnp.zeros((rows, lanes), jnp.float32)
    slab = slab.at[0:S, 0:H].set(w1.T.astype(jnp.float32))
    slab = slab.at[S, 0:H].set(b1.astype(jnp.float32))
    slab = slab.at[S + 1, 0:A].set(b2.astype(jnp.float32))
    slab = slab.at[R0:R0 + H, 0:A].set(w2.T.astype(jnp.float32))
    return slab


def qnet_kernel(x_ref, p_ref, out_ref, *, S, H, A, R0):
    x = x_ref[...]                       # [B, S]

    # Static slices of the packed parameter slab (all within padded (8,128) tiles).
    w1t = p_ref[0:S, 0:H]                # [S, H]   (pre-transposed fc1 weight)
    b1 = p_ref[S:S + 1, 0:H]             # [1, H]
    b2 = p_ref[S + 1:S + 2, 0:A]         # [1, A]
    w2t = p_ref[R0:R0 + H, 0:A]          # [H, A]   (pre-transposed fc2 weight)

    # fc1: h[b, :] = b1 + sum_s x[b, s] * w1t[s, :], then ReLU.
    # K = S is tiny (4): unrolled VPU FMAs, exact f32, no MXU push/drain.
    # Bias folded into the accumulator init.
    h = b1 + x[:, 0:1] * w1t[0:1, :]
    for s in range(1, S):
        h = h + x[:, s:s + 1] * w1t[s:s + 1, :]
    h = jnp.maximum(h, 0.0)              # [B, H]

    # fc2: K = H contraction, single MXU dot on the pre-transposed weight (no .T).
    out = jnp.dot(h, w2t, preferred_element_type=jnp.float32) + b2
    out_ref[...] = out.astype(out_ref.dtype)        # [B, A]


def qnet_apply(x, params_slab, *, state_dim, hidden_dim, action_dim):
    """x: [B, state_dim] f32; params_slab: output of pack_qnet_params -> [B, action_dim] f32."""
    B, S = x.shape
    assert S == state_dim
    H, A = hidden_dim, action_dim
    R0 = _round_up(S + 2, 8)

    flops = 2 * B * (S * H + H * A)
    bytes_accessed = 4 * (B * S + params_slab.size + B * A)

    vmem_spec = pl.BlockSpec(memory_space=pltpu.MemorySpace.VMEM)
    return pl.pallas_call(
        functools.partial(qnet_kernel, S=S, H=H, A=A, R0=R0),
        out_shape=jax.ShapeDtypeStruct((B, A), jnp.float32),
        in_specs=[vmem_spec, vmem_spec],
        out_specs=vmem_spec,
        cost_estimate=pl.CostEstimate(
            flops=flops, transcendentals=0, bytes_accessed=bytes_accessed),
    )(x, params_slab)


if __name__ == "__main__":
    # Shapes implied by Qnet(state_dim, hidden_dim, action_dim); CartPole-like dims.
    batch, state_dim, hidden_dim, action_dim = 2, 4, 32, 2

    key = jax.random.PRNGKey(0)
    kx, k1, k2, k3, k4 = jax.random.split(key, 5)

    x = jax.random.normal(kx, (batch, state_dim), dtype=jnp.float32)
    # PyTorch Linear convention: W [out, in], b [out].
    w1 = jax.random.normal(k1, (hidden_dim, state_dim), dtype=jnp.float32) * 0.1
    b1 = jax.random.normal(k2, (hidden_dim,), dtype=jnp.float32) * 0.1
    w2 = jax.random.normal(k3, (action_dim, hidden_dim), dtype=jnp.float32) * 0.1
    b2 = jax.random.normal(k4, (action_dim,), dtype=jnp.float32) * 0.1

    # Pack once (this represents storing the agent's params pre-transposed / pre-padded).
    params_slab = pack_qnet_params(w1, b1, w2, b2)
    params_slab = jax.block_until_ready(params_slab)

    out = qnet_apply(x, params_slab,
                     state_dim=state_dim, hidden_dim=hidden_dim, action_dim=action_dim)
    jax.block_until_ready(out)

    # Pure-JAX reference check of the forward semantics.
    ref = jnp.maximum(x @ w1.T + b1, 0.0) @ w2.T + b2
    assert out.shape == (batch, action_dim)
    assert jnp.allclose(out, ref, atol=1e-5, rtol=1e-5)

    print("KERNEL_OK")
</pallas_src>

<mosaic_0001>
module attributes {stable_mosaic.version = 11 : i64} {
  func.func @qnet_kernel(%arg0: memref<2x4xf32, #tpu.memory_space<vmem>>, %arg1: memref<40x128xf32, #tpu.memory_space<vmem>>, %arg2: memref<2x2xf32, #tpu.memory_space<vmem>>) attributes {dimension_semantics = [], scalar_prefetch = 0 : i64, scratch_operands = 0 : i64, tpu.core_type = #tpu.core_type<tc>} {
    %c0 = arith.constant 0 : index
    %c0_0 = arith.constant 0 : index
    %0 = vector.load %arg0[%c0, %c0_0] : memref<2x4xf32, #tpu.memory_space<vmem>>, vector<2x4xf32>
    %c0_1 = arith.constant 0 : index
    %c0_2 = arith.constant 0 : index
    %1 = vector.load %arg1[%c0_1, %c0_2] : memref<40x128xf32, #tpu.memory_space<vmem>>, vector<4x32xf32>
    %c4 = arith.constant 4 : index
    %c0_3 = arith.constant 0 : index
    %2 = vector.load %arg1[%c4, %c0_3] : memref<40x128xf32, #tpu.memory_space<vmem>>, vector<1x32xf32>
    %c5 = arith.constant 5 : index
    %c0_4 = arith.constant 0 : index
    %3 = vector.load %arg1[%c5, %c0_4] : memref<40x128xf32, #tpu.memory_space<vmem>>, vector<1x2xf32>
    %c8 = arith.constant 8 : index
    %c0_5 = arith.constant 0 : index
    %4 = vector.load %arg1[%c8, %c0_5] : memref<40x128xf32, #tpu.memory_space<vmem>>, vector<32x2xf32>
    %5 = vector.extract_strided_slice %0 {offsets = [0, 0], sizes = [2, 1], strides = [1, 1]} : vector<2x4xf32> to vector<2x1xf32>
    %6 = vector.extract_strided_slice %1 {offsets = [0, 0], sizes = [1, 32], strides = [1, 1]} : vector<4x32xf32> to vector<1x32xf32>
    %7 = vector.broadcast %5 : vector<2x1xf32> to vector<2x32xf32>
    %8 = vector.broadcast %6 : vector<1x32xf32> to vector<2x32xf32>
    %9 = arith.mulf %7, %8 : vector<2x32xf32>
    %10 = vector.broadcast %2 : vector<1x32xf32> to vector<2x32xf32>
    %11 = arith.addf %10, %9 : vector<2x32xf32>
    %12 = vector.extract_strided_slice %0 {offsets = [0, 1], sizes = [2, 1], strides = [1, 1]} : vector<2x4xf32> to vector<2x1xf32>
    %13 = vector.extract_strided_slice %1 {offsets = [1, 0], sizes = [1, 32], strides = [1, 1]} : vector<4x32xf32> to vector<1x32xf32>
    %14 = vector.broadcast %12 : vector<2x1xf32> to vector<2x32xf32>
    %15 = vector.broadcast %13 : vector<1x32xf32> to vector<2x32xf32>
    %16 = arith.mulf %14, %15 : vector<2x32xf32>
    %17 = arith.addf %11, %16 : vector<2x32xf32>
    %18 = vector.extract_strided_slice %0 {offsets = [0, 2], sizes = [2, 1], strides = [1, 1]} : vector<2x4xf32> to vector<2x1xf32>
    %19 = vector.extract_strided_slice %1 {offsets = [2, 0], sizes = [1, 32], strides = [1, 1]} : vector<4x32xf32> to vector<1x32xf32>
    %20 = vector.broadcast %18 : vector<2x1xf32> to vector<2x32xf32>
    %21 = vector.broadcast %19 : vector<1x32xf32> to vector<2x32xf32>
    %22 = arith.mulf %20, %21 : vector<2x32xf32>
    %23 = arith.addf %17, %22 : vector<2x32xf32>
    %24 = vector.extract_strided_slice %0 {offsets = [0, 3], sizes = [2, 1], strides = [1, 1]} : vector<2x4xf32> to vector<2x1xf32>
    %25 = vector.extract_strided_slice %1 {offsets = [3, 0], sizes = [1, 32], strides = [1, 1]} : vector<4x32xf32> to vector<1x32xf32>
    %26 = vector.broadcast %24 : vector<2x1xf32> to vector<2x32xf32>
    %27 = vector.broadcast %25 : vector<1x32xf32> to vector<2x32xf32>
    %28 = arith.mulf %26, %27 : vector<2x32xf32>
    %29 = arith.addf %23, %28 : vector<2x32xf32>
    %cst = arith.constant 0.000000e+00 : f32
    %30 = vector.broadcast %cst : f32 to vector<2x32xf32>
    %31 = arith.maximumf %29, %30 : vector<2x32xf32>
    %cst_6 = arith.constant dense<0.000000e+00> : vector<2x2xf32>
    %32 = tpu.matmul %31, %4, %cst_6 {dimension_numbers = #tpu.dot_dimension_numbers<[1], [0], [0], [1], [0, 0, 1, 1], [], []>} : vector<2x32xf32>, vector<32x2xf32>, vector<2x2xf32> -> vector<2x2xf32>
    %33 = vector.broadcast %3 : vector<1x2xf32> to vector<2x2xf32>
    %34 = arith.addf %32, %33 : vector<2x2xf32>
    %c0_7 = arith.constant 0 : index
    %c0_8 = arith.constant 0 : index
    %35 = vector.load %arg2[%c0_7, %c0_8] : memref<2x2xf32, #tpu.memory_space<vmem>>, vector<2x2xf32>
    tpu.vector_store %arg2[%c0_7, %c0_8], %34 {strides = array<i32>} : memref<2x2xf32, #tpu.memory_space<vmem>>, vector<2x2xf32>,
    return
  }
}

</mosaic_0001>

<bundles_post_ra>
// kernel: tpu_custom_call.1
= control target key start
LH: loop header
LB: loop body
LE: loop exit
PB: predicated region body
PF: predicated region fallthrough
CT: control target
= control target key end

     0   :  { %7 = vsyncpa [#allocation3], 0  ;;  %s372_s0 = inlined_call_operand.hbm [shape: f32[2,4], index: 0, kind: input, shape index: {}]   ;;  %s373_s1 = inlined_call_operand.hbm [shape: f32[40,128], index: 1, kind: input, shape index: {}]   ;;  %s374_s2 = inlined_call_operand.hbm [shape: f32[2,2], index: 2, kind: output, shape index: {}]  }
   0x1   :  { %8 = vsyncpa [#allocation6], 0 }
   0x2   :  { %9 = vsyncpa [#allocation4], 0  ;;  %s302_s9 = smov [#allocation2]   ;;  %s303_s11 = smov [#allocation5]  }
   0x3   :  { %s16_s10 = sshll.u32 %s302_s9, 4  ;;  %s25_s12 = sshll.u32 %s303_s11, 4  ;;  %s17_s10 = int_to_ptr.vmem [resolvable:$true] %s16_s10  ;;  %s329_s12 = int_to_ptr.vmem [resolvable:$true] %s25_s12 }
   0x4   :  { %s230_s15 = scalar_lea.hbm %s372_s0, 32 }
   0x5   :  { %p231_p0 = scmp.ne.s32.totalorder %s372_s0, %s230_s15  ;;  %p234_p1 = scmp.lt.u32.totalorder %s230_s15, %s372_s0 }
   0x7   :  { %p236_p2 = pnand %p234_p1, %p231_p0 }
   0x9   :  { %239 = shalt.err (!%p236_p2)
}
   0xa   :  { %s240_s20 = scalar_lea.vmem %s17_s10, 32  ;;  %p245_p4 = scmp.lt.s32.totalorder %s17_s10, %s17_s10 }
   0xb   :  { %p241_p3 = scmp.ne.s32.totalorder %s17_s10, %s240_s20  ;;  %p246_p5 = scmp.lt.s32.totalorder %s240_s20, %s240_s20 }
   0xd   :  { %p247_p6 = por %p246_p5, %p245_p4 }
   0xf   :  { %p248_p7 = pnand %p247_p6, %p241_p3 }
  0x11   :  { %251 = shalt.err (!%p248_p7)
}
  0x12   :  { %19 = dma.hbm_to_vmem [thread:$0]  %s372_s0, 32, %s17_s10, [#allocation3]  }
  0x13   :  { %s252_s25 = scalar_lea.hbm %s373_s1, 640 }
  0x14   :  { %p253_p8 = scmp.ne.s32.totalorder %s373_s1, %s252_s25  ;;  %p256_p9 = scmp.lt.u32.totalorder %s252_s25, %s373_s1 }
  0x16   :  { %p258_p10 = pnand %p256_p9, %p253_p8 }
  0x18   :  { %261 = shalt.err (!%p258_p10)
}
  0x19   :  { %s262_s30 = scalar_lea.vmem %s329_s12, 640  ;;  %p267_p12 = scmp.lt.s32.totalorder %s329_s12, %s329_s12 }
  0x1a   :  { %p263_p11 = scmp.ne.s32.totalorder %s329_s12, %s262_s30  ;;  %p268_p13 = scmp.lt.s32.totalorder %s262_s30, %s262_s30 }
  0x1c   :  { %p269_p0 = por %p268_p13, %p267_p12 }
  0x1e   :  { %p270_p1 = pnand %p269_p0, %p263_p11 }
  0x20   :  { %273 = shalt.err (!%p270_p1)
}
  0x21   :  { %s304_s0 = smov 128   ;;  %s305_s3 = smov 8  }
  0x22   :  { %31 = dma.hbm_to_vmem [thread:$0]  %s373_s1, 640, %s329_s12, [#allocation6], %s304_s0, %s304_s0, %s305_s3  }
  0x23   :  { %296 = dma.done.wait [#allocation3], 32  }
  0x24   :  { %297 = vsyncadd [#allocation3], 4294967264 }
  0x25   :  { %298 = dma.done.wait [#allocation6], 640  }
  0x26   :  { %299 = vsyncadd [#allocation6], 4294966656  ;;  %v306_v0 = vmov 0   ;;  %v307_v1 = vmov 2   ;;  %v38_v2 = vld [vmem:[#allocation2] sm:$0x3]  ;;  %v51_v13 = vlaneseq }
  0x27   :  { %225 = vset.pattern.permute.xlu0 %v306_v0  ;;  %227 = vset.pattern.permute.xlu1 %v307_v1  ;;  %v308_v3 = vmov 1   ;;  %v309_v4 = vmov 3   ;;  %v42_v5 = vld [vmem:[#allocation5 + $0x8] sm:$0xff]  ;;  %v43_v6 = vld [vmem:[#allocation5 + $0x10] sm:$0xff]  ;;  %v310_v8 = vmov 0.0|0.0   ;;  %v44_v9 = vld [vmem:[#allocation5 + $0x18] sm:$0xff] }
  0x28   :  { %48 = vperm.xlu0 %225, %v38_v2   ;;  %72 = vperm.xlu1 %227, %v38_v2   ;;  %v208_v7 = vpack.c.bf16 %v43_v6, %v42_v5  ;;  %v45_v10 = vld [vmem:[#allocation5 + $0x20] sm:$0xff]  ;;  %vm311_vm0 = vmmov 0   ;;  %v312_v12 = vmov 0.0   ;;  %v52_v14 = vshrl.u32 %v51_v13, 7  ;;  %s313_s1 = smov [#allocation7]  }
  0x29   :  { %207 = vmatprep.subr.bf16.mxu0 %v310_v8  ;;  %v211_v11 = vpack.c.bf16 %v45_v10, %v44_v9  ;;  %204 = vmatprep.mubr.msk.f32.mxu0 %vm311_vm0, %v312_v12  ;;  %v39_v16 = vld [vmem:[#allocation5] sm:$0xf]  ;;  %v188_v25 = vld [vmem:[#allocation5 + $0x4] ss:$0 sm:$0xff]  ;;  %vm96_vm1 = vcmask 261120   ;;  %s178_s6 = sshll.u32 %s313_s1, 4  ;;  %s179_s6 = int_to_ptr.vmem [resolvable:$true] %s178_s6 }
  0x2a   :  { %209 = vmatpush3.bf16.msra.mxu0 %v208_v7  ;;  %v53_v15 = vsub.s32 0, %v52_v14  ;;  %v67_v18 = vsub.s32 1, %v52_v14  ;;  %v77_v20 = vsub.s32 2, %v52_v14  ;;  %v87_v22 = vsub.s32 3, %v52_v14  ;;  %v189_v38 = vld [vmem:[#allocation5 + $0x5] ss:$0 sm:$0xff]  ;;  %p279_p3 = scmp.lt.s32.totalorder %s179_s6, %s179_s6 }
  0x2b   :  { %210 = vmatprep.subr.bf16.mxu0 %v310_v8  ;;  %vm170_vm2 = vcmask 9216   ;;  %s274_s7 = scalar_lea.vmem %s179_s6, 32 }
  0x2c   :  { %226 = vset.pattern.permute.xlu0 %v308_v3  ;;  %228 = vset.pattern.permute.xlu1 %v309_v4  ;;  %v54_v17 = vrot.slane %v39_v16, %v53_v15  ;;  %v68_v24 = vrot.slane %v39_v16, %v67_v18  ;;  %v78_v26 = vrot.slane %v39_v16, %v77_v20  ;;  %p275_p2 = scmp.ne.s32.totalorder %s179_s6, %s274_s7  ;;  %p280_p4 = scmp.lt.s32.totalorder %s274_s7, %s274_s7 }
  0x2d   :  { %62 = vperm.xlu0 %226, %v38_v2   ;;  %82 = vperm.xlu1 %228, %v38_v2   ;;  %v88_v27 = vrot.slane %v39_v16, %v87_v22 }
  0x2e   :  { %212 = vmatpush3.bf16.msra.mxu0 %v211_v11  ;;  %p281_p5 = por %p280_p4, %p279_p3 }
  0x30   :  { %p282_p6 = pnand %p281_p5, %p275_p2 }
  0x31   :  { %229 = vset.pattern.permute.xlu0 %v309_v4 }
  0xa7   :  { %v49_v19 = vpop.permute.xlu0 %48  ;;  %v73_v21 = vpop.permute.xlu1 %72 }
  0xa8   :  { %v55_v23 = vmul.f32 %v54_v17, %v49_v19  ;;  %v79_v32 = vmul.f32 %v78_v26, %v73_v21 }
  0xaa   :  { %v60_v30 = vadd.f32 %v188_v25, %v55_v23 }
  0xac   :  { %v63_v28 = vpop.permute.xlu0 %62  ;;  %v83_v29 = vpop.permute.xlu1 %82 }
  0xad   :  { %v69_v31 = vmul.f32 %v68_v24, %v63_v28  ;;  %v89_v34 = vmul.f32 %v88_v27, %v83_v29 }
  0xaf   :  { %v70_v33 = vadd.f32 %v69_v31, %v60_v30 }
  0xb1   :  { %v80_v35 = vadd.f32 %v79_v32, %v70_v33 }
  0xb3   :  { %v90_v36 = vadd.f32 %v89_v34, %v80_v35 }
  0xb5   :  { %v91_v37 = vmax.f32 %v90_v36, 0.0 }
  0xb7   :  { %205 = vmatmul.mubr.msk.f32.vlgmr.msra.gmra.mrb[0].mxu0 %vm96_vm1, %v91_v37 }
 0x18a   :  { %v166_v39 = vpop.f32.mrb[0].mxu0 }
 0x18b   :  { %v167_v40 = vadd.f32 %v189_v38, %v166_v39  ;;  %v206_v41 = vpop.f32.mrb[1].mxu0 }
 0x18d   :  { %171 = vst.msk [vmem:[#allocation7] sm:$0x3] %vm170_vm2, %v167_v40 }
 0x18e   :  { %285 = shalt.err (!%p282_p6)
}
 0x18f   :  { %s286_s10 = scalar_lea.hbm %s374_s2, 32 }
 0x190   :  { %p287_p7 = scmp.ne.s32.totalorder %s374_s2, %s286_s10  ;;  %p290_p8 = scmp.lt.u32.totalorder %s286_s10, %s374_s2 }
 0x192   :  { %p292_p9 = pnand %p290_p8, %p287_p7 }
 0x194   :  { %295 = shalt.err (!%p292_p9)
}
 0x195   :  { %181 = dma.vmem_to_hbm [thread:$0]  %s179_s6, 32, %s374_s2, [#allocation4]  }
 0x196   :  { %300 = dma.done.wait [#allocation4], 32  }
 0x197   :  { %301 = vsyncadd [#allocation4], 4294967264 }
 0x198   :  { %185 = vsyncpa [#allocation3], 1 }
 0x199   :  { %186 = vsyncpa [#allocation6], 1 }
 0x19a   :  { %187 = vsyncpa [#allocation4], 1 }

</bundles_post_ra>
